<compile_context>
chip_gen: v7x
topology: tpu7x:2x2x1
jax: 0.10.0
libtpu: 0.0.40
codegen_flags: <defaults>
</compile_context>

<pallas_src>
import functools
import math

import jax
import jax.numpy as jnp
from jax.experimental import pallas as pl
from jax.experimental.pallas import tpu as pltpu


def _round_up(x, m):
    return (x + m - 1) // m * m


def _divisors_desc(n):
    return [d for d in range(n, 0, -1) if n % d == 0]


# ---------------------------------------------------------------------------
# Pallas kernel: on-chip patchify interleave + LayerNorm (affine folded into
# the weights) + bias-free Linear.
# ---------------------------------------------------------------------------
def _spm_kernel(x_ref, w_ref, b_ref, o_ref, *, eps):
    rh, p, wt, f = x_ref.shape                     # block: (rows, p1, W/p, p2*5C)
    tm = rh * wt
    d = p * f

    xb = x_ref[...]                                # (rh, p, wt, f)
    # Build the (tm, D) token matrix in VMEM with exact torch (p1 p2 c) feature
    # order: concatenate the p1 slices along the lane axis.  The (rh, wt)->tm
    # merge is layout-free; only the lane concat does on-chip shuffles.
    parts = [xb[:, j, :, :].reshape(tm, f) for j in range(p)]
    x2 = parts[0] if p == 1 else jnp.concatenate(parts, axis=-1)   # (tm, d)
    x = x2.astype(jnp.float32)

    # Two-pass (centered) LayerNorm statistics — closer to torch than E[x^2]-m^2.
    inv_d = jnp.float32(1.0 / d)
    mean = jnp.sum(x, axis=-1, keepdims=True) * inv_d
    xc = x - mean
    var = jnp.sum(xc * xc, axis=-1, keepdims=True) * inv_d
    xn = xc * jax.lax.rsqrt(var + jnp.float32(eps))

    # Feed the MXU at native bf16 rate when the folded weights were cast to bf16
    # (LN output is unit-variance, so bf16 is benign if tolerance allows).
    if w_ref.dtype == jnp.bfloat16:
        xn = xn.astype(jnp.bfloat16)
    acc = jnp.dot(xn, w_ref[...], preferred_element_type=jnp.float32)
    acc = acc + b_ref[...].astype(jnp.float32)

    o_ref[...] = acc.reshape(rh, wt, -1).astype(o_ref.dtype)


def _vmem_budget_bytes():
    try:
        cap = int(pltpu.get_tpu_info().vmem_capacity_bytes)
    except Exception:
        cap = 64 * 1024 * 1024            # conservative fallback (v7x per-TC size)
    return cap // 2, (cap * 3) // 4       # (working-set budget, scoped vmem limit)


def fused_merge_pallas(tokens, w_eff, b_eff, *, eps=1e-5):
    """tokens: (BH, p, W/p, p*5C) -> (BH, W/p, dim). Fused patchify+LN+Linear."""
    BH, p, Wt, F = tokens.shape
    D, dim = w_eff.shape
    assert D == p * F
    in_isz = jnp.dtype(tokens.dtype).itemsize
    w_isz = jnp.dtype(w_eff.dtype).itemsize

    budget, vmem_limit = _vmem_budget_bytes()
    row_cap = 1024 if budget >= 48 * 1024 * 1024 else 512   # tokens per grid step

    f_pad = _round_up(F, 128)
    d_pad = _round_up(D, 128)
    o_pad = _round_up(dim, 128)
    wt_pad = _round_up(Wt, 8)

    def vmem_bytes(rh):
        tm_pad = _round_up(rh * Wt, 8)
        in_tile = rh * p * wt_pad * f_pad * in_isz          # pipelined input block (lane padded)
        out_tile = rh * wt_pad * o_pad * in_isz             # pipelined output block
        weights = (d_pad * o_pad + o_pad) * w_isz           # folded W + bias (resident)
        temps = (3 * tm_pad * d_pad + tm_pad * o_pad) * 4   # in-kernel f32 temporaries
        # inputs/outputs and (default BlockSpec) weights are double buffered
        return 2 * (in_tile + out_tile) + 2 * weights + temps

    fitting = [d for d in _divisors_desc(BH)
               if d * Wt <= row_cap and vmem_bytes(d) <= budget]
    rh = None
    if fitting:
        for d in fitting:                 # biggest tile with an even step count >= 2 (megacore)
            q = BH // d
            if q >= 2 and q % 2 == 0:
                rh = d
                break
        if rh is None:
            for d in fitting:
                if BH // d >= 2:
                    rh = d
                    break
        if rh is None:
            rh = fitting[0]
    else:
        rh = 1

    grid = (BH // rh,)
    n_tok = BH * Wt
    cost = pl.CostEstimate(
        flops=2 * n_tok * D * dim + 10 * n_tok * D,
        transcendentals=n_tok,
        bytes_accessed=in_isz * (n_tok * D + n_tok * dim) + w_isz * (D * dim + dim),
    )

    out = pl.pallas_call(
        functools.partial(_spm_kernel, eps=eps),
        out_shape=jax.ShapeDtypeStruct((BH, Wt, dim), tokens.dtype),
        grid_spec=pltpu.PrefetchScalarGridSpec(
            num_scalar_prefetch=0,
            grid=grid,
            in_specs=[
                pl.BlockSpec((rh, p, Wt, F), lambda i: (i, 0, 0, 0)),  # token rows
                pl.BlockSpec((D, dim), lambda i: (0, 0)),              # resident folded weight
                pl.BlockSpec((1, dim), lambda i: (0, 0)),              # resident folded bias
            ],
            out_specs=pl.BlockSpec((rh, Wt, dim), lambda i: (i, 0, 0)),
        ),
        compiler_params=pltpu.CompilerParams(
            dimension_semantics=("parallel",),
            vmem_limit_bytes=int(vmem_limit),
        ),
        cost_estimate=cost,
    )(tokens, w_eff, b_eff)
    return out


# ---------------------------------------------------------------------------
# Glue: PatchShifting via NHWC; NO patchify transpose in HBM (free reshape only)
# ---------------------------------------------------------------------------
def patch_shift_tokens(x, p):
    """x: (B, C, H, W) NCHW -> (B*(H/p), p, W/p, p*5*C).

    This is a *contiguous* (free) reshape of the NHWC 5-way shifted concat; the
    (p1, p2, c) interleave that torch's Rearrange does in HBM happens on-chip
    inside the kernel, so the 5x-duplicated slab makes one HBM round trip."""
    shift = p // 2
    B, C, H, W = x.shape
    xh = jnp.transpose(x, (0, 2, 3, 1))                       # NHWC, 1x data only
    xpad = jnp.pad(xh, ((0, 0), (shift, shift), (shift, shift), (0, 0)))
    s2 = 2 * shift
    wins = [
        xh,                                                   # center  (== x)
        xpad[:, 0:H, 0:W, :],                                 # left-up
        xpad[:, 0:H, s2:s2 + W, :],                           # right-up
        xpad[:, s2:s2 + H, 0:W, :],                           # left-bottom
        xpad[:, s2:s2 + H, s2:s2 + W, :],                     # right-bottom
    ]
    xc = jnp.concatenate(wins, axis=-1)                       # (B, H, W, 5C): the only 5x write
    C5 = 5 * C
    Hp, Wt = H // p, W // p
    return xc.reshape(B * Hp, p, Wt, p * C5)                  # contiguous split/merge: free


# ---------------------------------------------------------------------------
# Parameter folding (hoisted out of the jitted forward) + module wrapper
# ---------------------------------------------------------------------------
def fold_merging_params(params, weights_dtype=None):
    """Fold the LayerNorm affine into the Linear once per parameter set:
    (xn*g + b) @ W == xn @ (g*W) + (b@W)."""
    d = params["w"].shape[0]
    gamma = params["ln_gamma"].reshape(d).astype(jnp.float32)
    beta = params["ln_beta"].reshape(d).astype(jnp.float32)
    w = params["w"].astype(jnp.float32)
    w_eff = gamma[:, None] * w
    b_eff = (beta @ w).reshape(1, -1)
    if weights_dtype is not None:
        w_eff = w_eff.astype(weights_dtype)    # e.g. jnp.bfloat16 for native MXU rate
    return {"w_eff": w_eff, "b_eff": b_eff}


def shifted_patch_merging(x, folded, merging_size, eps=1e-5):
    """Forward pass of ShiftedPatchMerging (exist_class_t=False, is_pe=True).
    x: (B, in_dim, H, W) NCHW.  Returns (B, (H/p)*(W/p), dim)."""
    B, _, H, W = x.shape
    p = merging_size
    tokens = patch_shift_tokens(x, p)                          # (B*H/p, p, W/p, p*5C)
    out = fused_merge_pallas(tokens, folded["w_eff"], folded["b_eff"], eps=eps)
    dim = folded["w_eff"].shape[1]
    return out.reshape(B, (H // p) * (W // p), dim)            # free reshape


def make_params(key, in_dim, dim, merging_size):
    patch_dim = in_dim * 5 * merging_size ** 2
    k1, k2, k3 = jax.random.split(key, 3)
    return {
        "ln_gamma": jax.random.normal(k1, (1, patch_dim), jnp.float32) * 0.1 + 1.0,
        "ln_beta": jax.random.normal(k2, (1, patch_dim), jnp.float32) * 0.1,
        # corresponds to nn.Linear(patch_dim, dim, bias=False).weight.T
        "w": jax.random.normal(k3, (patch_dim, dim), jnp.float32)
        / math.sqrt(patch_dim),
    }


# ---------------------------------------------------------------------------
# Pure-JAX reference: follows the torch module literally (NCHW concat + the
# original rearrange + two-pass LayerNorm) to independently check ordering.
# ---------------------------------------------------------------------------
def reference(x, params, merging_size, eps=1e-5):
    p = merging_size
    shift = p // 2
    B, C, H, W = x.shape
    xpad = jnp.pad(x, ((0, 0), (0, 0), (shift, shift), (shift, shift)))
    s2 = 2 * shift
    x_lu = xpad[:, :, :H, :W]
    x_ru = xpad[:, :, :H, s2:]
    x_lb = xpad[:, :, s2:, :W]
    x_rb = xpad[:, :, s2:, s2:]
    xcat = jnp.concatenate([x, x_lu, x_ru, x_lb, x_rb], axis=1)  # (B, 5C, H, W)
    C5 = 5 * C
    t = xcat.reshape(B, C5, H // p, p, W // p, p)
    t = t.transpose(0, 2, 4, 3, 5, 1).reshape(B, (H // p) * (W // p), p * p * C5)
    mean = jnp.mean(t, axis=-1, keepdims=True)
    var = jnp.mean((t - mean) ** 2, axis=-1, keepdims=True)
    tn = (t - mean) / jnp.sqrt(var + eps)
    tn = tn * params["ln_gamma"].reshape(-1) + params["ln_beta"].reshape(-1)
    return jnp.einsum("bld,de->ble", tn, params["w"])


if __name__ == "__main__":
    # Small config consistent with the module:
    # img_size=16, in_dim=4, dim=32, merging_size=2 -> patch_dim = 80, L = 64
    B, in_dim, img_size, dim, merging_size = 2, 4, 16, 32, 2

    key = jax.random.PRNGKey(0)
    kx, kp = jax.random.split(key)
    x = jax.random.normal(kx, (B, in_dim, img_size, img_size), jnp.float32)
    params = make_params(kp, in_dim, dim, merging_size)

    # LN-affine folding hoisted out of the jitted forward (done once per params).
    folded = fold_merging_params(params)

    fwd = jax.jit(shifted_patch_merging, static_argnums=(2,))
    out = jax.block_until_ready(fwd(x, folded, merging_size))

    ref = reference(x, params, merging_size)
    assert out.shape == (B, (img_size // merging_size) ** 2, dim), out.shape
    err = float(jnp.max(jnp.abs(out - ref)))
    assert err < 2e-4, err

    print("KERNEL_OK")
</pallas_src>

<mosaic_0001>
module attributes {stable_mosaic.version = 11 : i64} {
  func.func @_spm_kernel(%arg0: i32, %arg1: memref<8x2x8x40xf32, #tpu.memory_space<vmem>>, %arg2: memref<80x32xf32, #tpu.memory_space<vmem>>, %arg3: memref<1x32xf32, #tpu.memory_space<vmem>>, %arg4: memref<8x8x32xf32, #tpu.memory_space<vmem>>) attributes {dimension_semantics = [#tpu.dimension_semantics<parallel>], iteration_bounds = array<i64: 2>, scalar_prefetch = 0 : i64, scratch_operands = 0 : i64, tpu.core_type = #tpu.core_type<tc>, window_params = [{transform_indices = @transform_0, window_bounds = array<i64: 8, 2, 8, 40>}, {pipeline_mode = #tpu.pipeline_mode<synchronous>, transform_indices = @transform_1, window_bounds = array<i64: 80, 32>}, {pipeline_mode = #tpu.pipeline_mode<synchronous>, transform_indices = @transform_2, window_bounds = array<i64: 1, 32>}, {transform_indices = @transform_3, window_bounds = array<i64: 8, 8, 32>}]} {
    %c0 = arith.constant 0 : index
    %c0_0 = arith.constant 0 : index
    %c0_1 = arith.constant 0 : index
    %c0_2 = arith.constant 0 : index
    %0 = vector.load %arg1[%c0, %c0_0, %c0_1, %c0_2] : memref<8x2x8x40xf32, #tpu.memory_space<vmem>>, vector<8x2x8x40xf32>
    %1 = vector.extract_strided_slice %0 {offsets = [0, 0, 0, 0], sizes = [8, 1, 8, 40], strides = [1, 1, 1, 1]} : vector<8x2x8x40xf32> to vector<8x1x8x40xf32>
    %2 = vector.shape_cast %1 : vector<8x1x8x40xf32> to vector<8x8x40xf32>
    %3 = vector.shape_cast %2 : vector<8x8x40xf32> to vector<64x40xf32>
    %4 = vector.extract_strided_slice %0 {offsets = [0, 1, 0, 0], sizes = [8, 1, 8, 40], strides = [1, 1, 1, 1]} : vector<8x2x8x40xf32> to vector<8x1x8x40xf32>
    %5 = vector.shape_cast %4 : vector<8x1x8x40xf32> to vector<8x8x40xf32>
    %6 = vector.shape_cast %5 : vector<8x8x40xf32> to vector<64x40xf32>
    %7 = tpu.concatenate %3, %6 in 1 : vector<64x40xf32>, vector<64x40xf32> -> vector<64x80xf32>
    %cst = arith.constant dense<0.000000e+00> : vector<64xf32>
    %8 = vector.multi_reduction <add>, %7, %cst [1] : vector<64x80xf32> to vector<64xf32>
    %9 = vector.shape_cast %8 : vector<64xf32> to vector<64x1xf32>
    %cst_3 = arith.constant 1.250000e-02 : f32
    %10 = vector.broadcast %cst_3 : f32 to vector<64x1xf32>
    %11 = arith.mulf %9, %10 : vector<64x1xf32>
    %12 = vector.broadcast %11 : vector<64x1xf32> to vector<64x80xf32>
    %13 = arith.subf %7, %12 : vector<64x80xf32>
    %14 = arith.mulf %13, %13 : vector<64x80xf32>
    %cst_4 = arith.constant dense<0.000000e+00> : vector<64xf32>
    %15 = vector.multi_reduction <add>, %14, %cst_4 [1] : vector<64x80xf32> to vector<64xf32>
    %16 = vector.shape_cast %15 : vector<64xf32> to vector<64x1xf32>
    %cst_5 = arith.constant 1.250000e-02 : f32
    %17 = vector.broadcast %cst_5 : f32 to vector<64x1xf32>
    %18 = arith.mulf %16, %17 : vector<64x1xf32>
    %cst_6 = arith.constant 9.99999974E-6 : f32
    %19 = vector.broadcast %cst_6 : f32 to vector<64x1xf32>
    %20 = arith.addf %18, %19 : vector<64x1xf32>
    %21 = math.rsqrt %20 : vector<64x1xf32>
    %22 = vector.broadcast %21 : vector<64x1xf32> to vector<64x80xf32>
    %23 = arith.mulf %13, %22 : vector<64x80xf32>
    %c0_7 = arith.constant 0 : index
    %c0_8 = arith.constant 0 : index
    %24 = vector.load %arg2[%c0_7, %c0_8] : memref<80x32xf32, #tpu.memory_space<vmem>>, vector<80x32xf32>
    %cst_9 = arith.constant dense<0.000000e+00> : vector<64x32xf32>
    %25 = tpu.matmul %23, %24, %cst_9 {dimension_numbers = #tpu.dot_dimension_numbers<[1], [0], [0], [1], [0, 0, 1, 1], [], []>} : vector<64x80xf32>, vector<80x32xf32>, vector<64x32xf32> -> vector<64x32xf32>
    %c0_10 = arith.constant 0 : index
    %c0_11 = arith.constant 0 : index
    %26 = vector.load %arg3[%c0_10, %c0_11] : memref<1x32xf32, #tpu.memory_space<vmem>>, vector<1x32xf32>
    %27 = vector.broadcast %26 : vector<1x32xf32> to vector<64x32xf32>
    %28 = arith.addf %25, %27 : vector<64x32xf32>
    %29 = vector.shape_cast %28 : vector<64x32xf32> to vector<8x8x32xf32>
    %c0_12 = arith.constant 0 : index
    %c0_13 = arith.constant 0 : index
    %c0_14 = arith.constant 0 : index
    %30 = vector.load %arg4[%c0_12, %c0_13, %c0_14] : memref<8x8x32xf32, #tpu.memory_space<vmem>>, vector<8x8x32xf32>
    tpu.vector_store %arg4[%c0_12, %c0_13, %c0_14], %29 {strides = array<i32>} : memref<8x8x32xf32, #tpu.memory_space<vmem>>, vector<8x8x32xf32>,
    return
  }
  func.func @transform_0(%arg0: i32) -> (i32, i32, i32, i32) {
    %c0_i32 = arith.constant 0 : i32
    %c0_i32_0 = arith.constant 0 : i32
    %c0_i32_1 = arith.constant 0 : i32
    %c0_i32_2 = arith.constant 0 : i32
    return %arg0, %c0_i32, %c0_i32_0, %c0_i32_1 : i32, i32, i32, i32
  }
  func.func @transform_1(%arg0: i32) -> (i32, i32) {
    %c0_i32 = arith.constant 0 : i32
    %c0_i32_0 = arith.constant 0 : i32
    %c0_i32_1 = arith.constant 0 : i32
    return %c0_i32, %c0_i32_0 : i32, i32
  }
  func.func @transform_2(%arg0: i32) -> (i32, i32) {
    %c0_i32 = arith.constant 0 : i32
    %c0_i32_0 = arith.constant 0 : i32
    %c0_i32_1 = arith.constant 0 : i32
    return %c0_i32, %c0_i32_0 : i32, i32
  }
  func.func @transform_3(%arg0: i32) -> (i32, i32, i32) {
    %c0_i32 = arith.constant 0 : i32
    %c0_i32_0 = arith.constant 0 : i32
    %c0_i32_1 = arith.constant 0 : i32
    return %arg0, %c0_i32, %c0_i32_0 : i32, i32, i32
  }
}

</mosaic_0001>

<bundles_post_ra>
// kernel: shifted_patch_merging.1
= control target key start
LH: loop header
LB: loop body
LE: loop exit
PB: predicated region body
PF: predicated region fallthrough
CT: control target
= control target key end

     0   :  { %s706_s12 = smov 0   ;;  %s858_s0 = inlined_call_operand.vmem [shape: f32[16,2,8,40], index: 0, kind: input, shape index: {}]   ;;  %s859_s1 = inlined_call_operand.vmem [shape: f32[80,32], index: 1, kind: input, shape index: {}]   ;;  %s860_s2 = inlined_call_operand.vmem [shape: f32[1,32], index: 2, kind: input, shape index: {}]   ;;  %s861_s3 = inlined_call_operand.vmem [shape: f32[16,8,32], index: 3, kind: output, shape index: {}]  }
   0x1 LB: > { %s550_s13 = sadd.s32 4294967295, %s683_s12   ;;  %p554_p0 = scmp.ge.s32.totalorder %s683_s12, 1  ;;  %s683_s12 = sphi %s706_s12, %s13_s12  }
   0x2   : > { %p139_p1 = scmp.lt.s32.totalorder %s683_s12, 3 }
   0x4   : > { %p140_p2 = pnand %p554_p0, %p139_p1 }
   0x5   : > { %s555_s14 = sshll.u32 (!%p140_p2), %s550_s13, 3  ;;  %s685_s19 = smov (!%p140_p2), 40   ;;  %vm225_vm0 = vcmask (!%p140_p2), 326656   ;;  %vm234_vm1 = vcmask (!%p140_p2), 654336   ;;  %vm485_vm2 = vcmask (!%p140_p2), 261120  }
   0x6   : > { %143 = sbr.rel (%p140_p2) target bundleno = 674 (0x2a2), region = 32  ;;  %p165_p3 = scmp.lt.s32.totalorder (!%p140_p2), %s555_s14, 15 }
   0xd   : > { %s863_s14 = smov (!%p165_p3, %s555_s14), 15 }
   0xe   : > { %s571_s15 = sshll.u32 %s863_s14, 4 }
   0xf   : > { %s720_s18 = scalar_lea.vmem %s858_s0, %s571_s15  ;;  %s559_s15 = sshll.u32 %s863_s14, 3 }
  0x10   : > { %v178_v0 = vld [vmem:[%s720_s18 + $0x8] sm:$0xff]  ;;  %v180_v1 = vld [vmem:[%s720_s18 + $0x18] sm:$0xff]  ;;  %v177_v8 = vld [vmem:[%s720_s18] sm:$0xff]  ;;  %s175_s20 = scalar_lea.vmem %s861_s3, %s559_s15 }
  0x11   : > { %201 = vrot.lane.b32.xlu0 %v178_v0, %s685_s19  ;;  %203 = vrot.lane.b32.xlu1 %v180_v1, %s685_s19  ;;  %v186_v2 = vld [vmem:[%s720_s18 + $0x48] sm:$0xff]  ;;  %v188_v3 = vld [vmem:[%s720_s18 + $0x58] sm:$0xff] }
  0x12   : > { %v182_v4 = vld [vmem:[%s720_s18 + $0x28] sm:$0xff]  ;;  %v184_v6 = vld [vmem:[%s720_s18 + $0x38] sm:$0xff]  ;;  %v179_v9 = vld [vmem:[%s720_s18 + $0x10] sm:$0xff] }
  0x13   : > { %v190_v5 = vld [vmem:[%s720_s18 + $0x68] sm:$0xff]  ;;  %v192_v7 = vld [vmem:[%s720_s18 + $0x78] sm:$0xff]  ;;  %v185_v15 = vld [vmem:[%s720_s18 + $0x40] sm:$0xff] }
  0x14   : > { %v187_v16 = vld [vmem:[%s720_s18 + $0x50] sm:$0xff]  ;;  %v181_v23 = vld [vmem:[%s720_s18 + $0x20] sm:$0xff] }
  0x15   : > { %209 = vrot.lane.b32.xlu0 %v186_v2, %s685_s19  ;;  %211 = vrot.lane.b32.xlu1 %v188_v3, %s685_s19  ;;  %v189_v24 = vld [vmem:[%s720_s18 + $0x60] sm:$0xff]  ;;  %v183_v31 = vld [vmem:[%s720_s18 + $0x30] sm:$0xff] }
  0x16   : > { %v191_v32 = vld [vmem:[%s720_s18 + $0x70] sm:$0xff] }
  0x19   : > { %205 = vrot.lane.b32.xlu0 %v182_v4, %s685_s19  ;;  %213 = vrot.lane.b32.xlu1 %v190_v5, %s685_s19 }
  0x1d   : > { %207 = vrot.lane.b32.xlu0 %v184_v6, %s685_s19  ;;  %215 = vrot.lane.b32.xlu1 %v192_v7, %s685_s19 }
  0x83   : > { %v202_v10 = vpop.permute.xlu0 %201  ;;  %v204_v11 = vpop.permute.xlu1 %203 }
  0x84   : > { %v226_v12 = vsel %vm225_vm0, %v177_v8, %v202_v10  ;;  %v227_v13 = vsel %vm225_vm0, %v179_v9, %v204_v11 }
  0x85   : > { %v235_v14 = vsel %vm234_vm1, %v226_v12, 0.0  ;;  %v238_v18 = vsel %vm234_vm1, %v227_v13, 0.0 }
  0x86   : > { %236 = vadd.xlane.f32.xlu0 %v235_v14  ;;  %v339_v14 = vld [vmem:[%s859_s1] sm:$0xff] }
  0x87   : > { %v210_v17 = vpop.permute.xlu0 %209  ;;  %v212_v19 = vpop.permute.xlu1 %211 }
  0x88   : > { %v230_v20 = vsel %vm225_vm0, %v185_v15, %v210_v17  ;;  %v231_v21 = vsel %vm225_vm0, %v187_v16, %v212_v19  ;;  %v340_v15 = vld [vmem:[%s859_s1 + $0x8] sm:$0xff]  ;;  %v341_v19 = vld [vmem:[%s859_s1 + $0x10] sm:$0xff] }
  0x89   : > { %v247_v22 = vsel %vm234_vm1, %v230_v20, 0.0  ;;  %v250_v26 = vsel %vm234_vm1, %v231_v21, 0.0  ;;  %v622_v17 = vpack.c.bf16 %v340_v15, %v339_v14 }
  0x8a   : > { %248 = vadd.xlane.f32.xlu1 %v247_v22  ;;  %239 = vadd.xlane.f32.xlu0 %v238_v18  ;;  %v343_v22 = vld [vmem:[%s859_s1 + $0x20] sm:$0xff] }
  0x8b   : > { %v206_v25 = vpop.permute.xlu0 %205  ;;  %v214_v27 = vpop.permute.xlu1 %213  ;;  %623 = vmatprep.subr.bf16.mxu0 %v622_v17  ;;  %642 = vmatprep.subr.bf16.mxu1 %v622_v17 }
  0x8c   : > { %v228_v28 = vsel %vm225_vm0, %v181_v23, %v206_v25  ;;  %v232_v29 = vsel %vm225_vm0, %v189_v24, %v214_v27  ;;  %625 = vmatpush3.bf16.msra.mxu0 %v622_v17  ;;  %647 = vmatpush3.bf16.msra.mxu1 %v622_v17  ;;  %v344_v23 = vld [vmem:[%s859_s1 + $0x28] sm:$0xff]  ;;  %v345_v25 = vld [vmem:[%s859_s1 + $0x30] sm:$0xff] }
  0x8d   : > { %v241_v30 = vsel %vm234_vm1, %v228_v28, 0.0  ;;  %v253_v34 = vsel %vm234_vm1, %v232_v29, 0.0  ;;  %v630_v24 = vpack.c.bf16 %v344_v23, %v343_v22 }
  0x8e   : > { %242 = vadd.xlane.f32.xlu1 %v241_v30  ;;  %251 = vadd.xlane.f32.xlu0 %v250_v26  ;;  %v346_v26 = vld [vmem:[%s859_s1 + $0x38] sm:$0xff] }
  0x8f   : > { %v208_v33 = vpop.permute.xlu0 %207  ;;  %v216_v35 = vpop.permute.xlu1 %215  ;;  %v634_v27 = vpack.c.bf16 %v346_v26, %v345_v25 }
  0x90   : > { %v229_v36 = vsel %vm225_vm0, %v183_v31, %v208_v33  ;;  %v233_v37 = vsel %vm225_vm0, %v191_v32, %v216_v35 }
  0x91   : > { %v244_v38 = vsel %vm234_vm1, %v229_v36, 0.0  ;;  %v256_v39 = vsel %vm234_vm1, %v233_v37, 0.0 }
  0x92   : > { %245 = vadd.xlane.f32.xlu1 %v244_v38  ;;  %254 = vadd.xlane.f32.xlu0 %v253_v34 }
  0x96   : > { %257 = vadd.xlane.f32.xlu0 %v256_v39 }
 0x113   : > { %v237_v40 = vpop.xlane.xlu0 %236 }
 0x114   : > { %v259_v41 = vmul.f32 0.0125, %v237_v40 }
 0x116   : > { %v754_v42 = vsub.f32 %v226_v12, %v259_v41 }
 0x117   : > { %v249_v43 = vpop.xlane.xlu1 %248  ;;  %v240_v44 = vpop.xlane.xlu0 %239 }
 0x118   : > { %v263_v45 = vmul.f32 0.0125, %v249_v43  ;;  %v260_v46 = vmul.f32 0.0125, %v240_v44  ;;  %v275_v47 = vmul.f32 %v754_v42, %v754_v42 }
 0x11a   : > { %v758_v48 = vsub.f32 %v230_v20, %v263_v45  ;;  %v760_v49 = vsub.f32 %v227_v13, %v260_v46  ;;  %v283_v50 = vsel %vm234_vm1, %v275_v47, 0.0  ;;  %v342_v20 = vld [vmem:[%s859_s1 + $0x18] sm:$0xff] }
 0x11b   : > { %v243_v51 = vpop.xlane.xlu1 %242  ;;  %284 = vadd.xlane.f32.xlu1 %v283_v50  ;;  %v252_v52 = vpop.xlane.xlu0 %251 }
 0x11c   : > { %v261_v53 = vmul.f32 0.0125, %v243_v51  ;;  %v264_v54 = vmul.f32 0.0125, %v252_v52  ;;  %v279_v55 = vmul.f32 %v758_v48, %v758_v48  ;;  %v276_v56 = vmul.f32 %v760_v49, %v760_v49 }
 0x11e   : > { %v767_v57 = vsub.f32 %v228_v28, %v261_v53  ;;  %v769_v58 = vsub.f32 %v231_v21, %v264_v54  ;;  %v295_v59 = vsel %vm234_vm1, %v279_v55, 0.0  ;;  %v286_v60 = vsel %vm234_vm1, %v276_v56, 0.0  ;;  %v347_v28 = vld [vmem:[%s859_s1 + $0x40] sm:$0xff] }
 0x11f   : > { %v246_v61 = vpop.xlane.xlu1 %245  ;;  %296 = vadd.xlane.f32.xlu0 %v295_v59  ;;  %287 = vadd.xlane.f32.xlu1 %v286_v60  ;;  %v255_v62 = vpop.xlane.xlu0 %254  ;;  %v626_v21 = vpack.c.bf16 %v342_v20, %v341_v19 }
 0x120   : > { %v262_v63 = vmul.f32 0.0125, %v246_v61  ;;  %v265_v0 = vmul.f32 0.0125, %v255_v62  ;;  %v277_v1 = vmul.f32 %v767_v57, %v767_v57  ;;  %v280_v2 = vmul.f32 %v769_v58, %v769_v58 }
 0x121   : > { %627 = vmatprep.subr.bf16.mxu0 %v626_v21  ;;  %643 = vmatprep.subr.bf16.mxu1 %v626_v21 }
 0x122   : > { %v777_v3 = vsub.f32 %v229_v36, %v262_v63  ;;  %v779_v4 = vsub.f32 %v232_v29, %v265_v0  ;;  %v289_v5 = vsel %vm234_vm1, %v277_v1, 0.0  ;;  %v298_v6 = vsel %vm234_vm1, %v280_v2, 0.0  ;;  %629 = vmatpush3.bf16.msra.mxu0 %v626_v21  ;;  %648 = vmatpush3.bf16.msra.mxu1 %v626_v21  ;;  %v348_v29 = vld [vmem:[%s859_s1 + $0x48] sm:$0xff] }
 0x123   : > { %290 = vadd.xlane.f32.xlu1 %v289_v5  ;;  %299 = vadd.xlane.f32.xlu0 %v298_v6  ;;  %v258_v7 = vpop.xlane.xlu0 %257  ;;  %v638_v30 = vpack.c.bf16 %v348_v29, %v347_v28 }
 0x124   : > { %v266_v8 = vmul.f32 0.0125, %v258_v7  ;;  %v278_v9 = vmul.f32 %v777_v3, %v777_v3  ;;  %v281_v10 = vmul.f32 %v779_v4, %v779_v4  ;;  %631 = vmatprep.subr.bf16.mxu0 %v630_v24  ;;  %644 = vmatprep.subr.bf16.mxu1 %v630_v24 }
 0x126   : > { %v787_v11 = vsub.f32 %v233_v37, %v266_v8  ;;  %v292_v12 = vsel %vm234_vm1, %v278_v9, 0.0  ;;  %v301_v13 = vsel %vm234_vm1, %v281_v10, 0.0  ;;  %633 = vmatpush3.bf16.msra.mxu0 %v630_v24  ;;  %649 = vmatpush3.bf16.msra.mxu1 %v630_v24 }
 0x127   : > { %293 = vadd.xlane.f32.xlu1 %v292_v12  ;;  %302 = vadd.xlane.f32.xlu0 %v301_v13 }
 0x128   : > { %v282_v16 = vmul.f32 %v787_v11, %v787_v11  ;;  %635 = vmatprep.subr.bf16.mxu0 %v634_v27  ;;  %645 = vmatprep.subr.bf16.mxu1 %v634_v27 }
 0x12a   : > { %v304_v18 = vsel %vm234_vm1, %v282_v16, 0.0  ;;  %637 = vmatpush3.bf16.msra.mxu0 %v634_v27  ;;  %650 = vmatpush3.bf16.msra.mxu1 %v634_v27 }
 0x12b   : > { %305 = vadd.xlane.f32.xlu0 %v304_v18  ;;  %639 = vmatprep.subr.bf16.mxu0 %v638_v30 }
 0x12c   : > { %646 = vmatprep.subr.bf16.mxu1 %v638_v30 }
 0x12e   : > { %641 = vmatpush3.bf16.msra.mxu0 %v638_v30  ;;  %651 = vmatpush3.bf16.msra.mxu1 %v638_v30 }
 0x1a8   : > { %v285_v31 = vpop.xlane.xlu1 %284 }
 0x1a9   : > { %v307_v32 = vmul.f32 0.0125, %v285_v31 }
 0x1ab   : > { %v315_v33 = vadd.f32 1e-05, %v307_v32 }
 0x1ac   : > { %v288_v34 = vpop.xlane.xlu1 %287  ;;  %v297_v35 = vpop.xlane.xlu0 %296 }
 0x1ad   : > { %661 = vrsqrt.f32 %v315_v33  ;;  %v308_v36 = vmul.f32 0.0125, %v288_v34  ;;  %v311_v37 = vmul.f32 0.0125, %v297_v35 }
 0x1af   : > { %v316_v38 = vadd.f32 1e-05, %v308_v36  ;;  %v319_v39 = vadd.f32 1e-05, %v311_v37 }
 0x1b0   : > { %v291_v40 = vpop.xlane.xlu1 %290  ;;  %v300_v41 = vpop.xlane.xlu0 %299 }
 0x1b1   : > { %663 = vrsqrt.f32 %v316_v38  ;;  %v309_v43 = vmul.f32 0.0125, %v291_v40  ;;  %v312_v44 = vmul.f32 0.0125, %v300_v41 }
 0x1b2   : > { %665 = vrsqrt.f32 %v319_v39 }
 0x1b3   : > { %v317_v45 = vadd.f32 1e-05, %v309_v43  ;;  %v320_v46 = vadd.f32 1e-05, %v312_v44 }
 0x1b4   : > { %v294_v47 = vpop.xlane.xlu1 %293  ;;  %v303_v50 = vpop.xlane.xlu0 %302 }
 0x1b5   : > { %667 = vrsqrt.f32 %v317_v45  ;;  %v310_v51 = vmul.f32 0.0125, %v294_v47  ;;  %v313_v52 = vmul.f32 0.0125, %v303_v50 }
 0x1b6   : > { %669 = vrsqrt.f32 %v320_v46 }
 0x1b7   : > { %v662_v53 = vpop.eup %661  ;;  %v318_v54 = vadd.f32 1e-05, %v310_v51  ;;  %v321_v55 = vadd.f32 1e-05, %v313_v52 }
 0x1b8   : > { %v306_v56 = vpop.xlane.xlu0 %305  ;;  %v331_v59 = vmul.f32 %v662_v53, %v754_v42 }
 0x1b9   : > { %671 = vrsqrt.f32 %v318_v54  ;;  %v314_v60 = vmul.f32 0.0125, %v306_v56 }
 0x1ba   : > { %673 = vrsqrt.f32 %v321_v55  ;;  %610 = vmatprep.mubr.msk.f32.mxu0 %vm234_vm1, %v331_v59 }
 0x1bb   : > { %v664_v61 = vpop.eup %663  ;;  %v322_v62 = vadd.f32 1e-05, %v314_v60 }
 0x1bc   : > { %v666_v63 = vpop.eup %665  ;;  %v332_v0 = vmul.f32 %v664_v61, %v760_v49 }
 0x1bd   : > { %675 = vrsqrt.f32 %v322_v62  ;;  %v335_v1 = vmul.f32 %v666_v63, %v758_v48 }
 0x1be   : > { %611 = vmatmul.mubr.msk.f32.vlgmr.msra.gmra.mrb[0].mxu0 %vm234_vm1, %v332_v0 }
 0x1bf   : > { %v668_v2 = vpop.eup %667  ;;  %616 = vmatprep.mubr.msk.f32.mxu1 %vm234_vm1, %v335_v1 }
 0x1c0   : > { %v670_v42 = vpop.eup %669  ;;  %v333_v5 = vmul.f32 %v668_v2, %v767_v57  ;;  %v560_v57 = vld [vmem:[%s860_s2] ss:$0 sm:$0xff] }
 0x1c1   : > { %v336_v6 = vmul.f32 %v670_v42, %v769_v58 }
 0x1c2   : > { %613 = vmatprep.mubr.msk.f32.mxu0 %vm234_vm1, %v333_v5 }
 0x1c3   : > { %v672_v7 = vpop.eup %671  ;;  %617 = vmatmul.mubr.msk.f32.vlgmr.msra.gmra.mrb[0].mxu1 %vm234_vm1, %v336_v6 }
 0x1c4   : > { %v674_v49 = vpop.eup %673  ;;  %v334_v8 = vmul.f32 %v672_v7, %v777_v3 }
 0x1c5   : > { %v337_v48 = vmul.f32 %v674_v49, %v779_v4 }
 0x1c6   : > { %614 = vmatmul.mubr.msk.f32.gmra.mrb[2].mxu0 %vm234_vm1, %v334_v8 }
 0x1c7   : > { %v676_v9 = vpop.eup %675  ;;  %619 = vmatprep.mubr.msk.f32.mxu1 %vm234_vm1, %v337_v48 }
 0x1c8   : > { %v338_v10 = vmul.f32 %v676_v9, %v787_v11 }
 0x1ca   : > { %620 = vmatmul.mubr.msk.f32.gmra.mrb[2].mxu1 %vm234_vm1, %v338_v10 }
 0x291   : > { %v612_v58 = vpop.f32.mrb[0].mxu0 }
 0x292   : > { %v452_v3 = vadd.f32 %v612_v58, %v560_v57  ;;  %v446_v4 = vpop.f32.mrb[1].mxu0 }
 0x293   : > { %v447_v12 = vadd.f32 %v560_v57, %v446_v4 }
 0x294   : > { %487 = vst.msk [vmem:[%s175_s20 + $0x8] sm:$0xff] %vm485_vm2, %v452_v3 }
 0x295   : > { %486 = vst.msk [vmem:[%s175_s20] sm:$0xff] %vm485_vm2, %v447_v12 }
 0x296   : > { %v618_v11 = vpop.f32.mrb[0].mxu1 }
 0x297   : > { %v472_v13 = vadd.f32 %v618_v11, %v560_v57  ;;  %v466_v14 = vpop.f32.mrb[1].mxu1 }
 0x298   : > { %v467_v15 = vadd.f32 %v560_v57, %v466_v14 }
 0x299   : > { %491 = vst.msk [vmem:[%s175_s20 + $0x28] sm:$0xff] %vm485_vm2, %v472_v13  ;;  %v615_v16 = vpop.f32.mrb[2].mxu0 }
 0x29a   : > { %490 = vst.msk [vmem:[%s175_s20 + $0x20] sm:$0xff] %vm485_vm2, %v467_v15  ;;  %v462_v17 = vadd.f32 %v615_v16, %v560_v57  ;;  %v456_v18 = vpop.f32.mrb[3].mxu0 }
 0x29b   : > { %v457_v19 = vadd.f32 %v560_v57, %v456_v18 }
 0x29c   : > { %489 = vst.msk [vmem:[%s175_s20 + $0x18] sm:$0xff] %vm485_vm2, %v462_v17 }
 0x29d   : > { %488 = vst.msk [vmem:[%s175_s20 + $0x10] sm:$0xff] %vm485_vm2, %v457_v19  ;;  %v621_v20 = vpop.f32.mrb[2].mxu1 }
 0x29e   : > { %v482_v21 = vadd.f32 %v621_v20, %v560_v57  ;;  %v476_v22 = vpop.f32.mrb[3].mxu1 }
 0x29f   : > { %v477_v23 = vadd.f32 %v560_v57, %v476_v22 }
 0x2a0   : > { %493 = vst.msk [vmem:[%s175_s20 + $0x38] sm:$0xff] %vm485_vm2, %v482_v21 }
 0x2a1   : > { %492 = vst.msk [vmem:[%s175_s20 + $0x30] sm:$0xff] %vm485_vm2, %v477_v23 }
 0x2a2 PF: > { %s13_s12 = sadd.s32 1, %s683_s12  }
 0x2a3   : > { %p10_p4 = scmp.ge.s32.totalorder %s13_s12, 4  }
 0x2a5   :  { %12 = sbr.rel (!%p10_p4) target bundleno = 1 (0x1), region = 62 }

</bundles_post_ra>
